<compile_context>
chip_gen: v5e
topology: v5e:2x2
jax: 0.10.0
libtpu: 0.0.40
codegen_flags: <defaults>
</compile_context>

<pallas_src>
import functools

import jax
import jax.numpy as jnp
from jax import lax
from jax.experimental import pallas as pl
from jax.experimental.pallas import tpu as pltpu


def _ode_euler_kernel(x_ref, w1_ref, b1_ref, w2_ref, b2_ref, out_ref, *,
                      dt: float, substeps: int, n_times: int,
                      compute_dtype, unroll_time: bool):
    """Integrate dh/dt = MLP(h) with Euler steps; record state at each unit time.

    x_ref  : (tb, D)            initial latents for this batch tile
    w1_ref : (D, H), b1_ref : (1, H)
    w2_ref : (H, D), b2_ref : (1, D)
    out_ref: (tb, T*D)  if unroll_time   (lane-dense, static stores)
             (tb, T, D) otherwise        (dynamic-sublane stores)
    """
    d = x_ref.shape[1]
    f32 = jnp.float32
    mxu_f32 = jnp.dtype(compute_dtype) == jnp.dtype(jnp.float32)

    # --- Loop-invariant prep (once per batch tile) ---------------------------
    # Weights cast to the MXU dtype; dt folded into the second layer:
    #   h += z @ (dt*W2) + dt*b2.
    # Biases stay (1,H)/(1,D): the adds below do a cheap sublane broadcast per
    # use instead of pinning (tb,H)+(tb,D) vregs live across the whole loop.
    w1 = w1_ref[...].astype(compute_dtype)
    w2_dt = (w2_ref[...] * f32(dt)).astype(compute_dtype)
    b1 = b1_ref[...].astype(f32)
    b2_dt = b2_ref[...].astype(f32) * f32(dt)

    def euler_step(_, h):
        # h is a register-carried (tb, D) f32 value (no VMEM round-trip).
        a = jnp.dot(h.astype(compute_dtype), w1, preferred_element_type=f32) + b1
        if mxu_f32:
            z = jnp.tanh(a)
        else:
            # bf16 tanh (v6e/v7x EUP supports bf16); also removes the separate
            # cast of z before the second matmul.
            z = jnp.tanh(a.astype(compute_dtype))
        return h + (jnp.dot(z.astype(compute_dtype), w2_dt,
                            preferred_element_type=f32) + b2_dt)

    unroll_sub = substeps <= 8  # short fixed trip-count -> full LLO visibility
    h = x_ref[...].astype(f32)

    if unroll_time:
        # Small T: static time loop + lane-dense flattened stores.
        out_ref[:, 0:d] = h.astype(out_ref.dtype)
        for t in range(1, n_times):
            h = lax.fori_loop(0, substeps, euler_step, h, unroll=unroll_sub)
            out_ref[:, t * d:(t + 1) * d] = h.astype(out_ref.dtype)
    else:
        # Large T: keep program size flat with a fori_loop over time and a
        # dynamic-sublane store into the (tb, T, D) output block.
        out_ref[:, 0, :] = h.astype(out_ref.dtype)

        def time_step(t, hh):
            hh = lax.fori_loop(0, substeps, euler_step, hh, unroll=unroll_sub)
            out_ref[:, t, :] = hh.astype(out_ref.dtype)
            return hh

        lax.fori_loop(1, n_times, time_step, h)


def _pick_batch_tile(B: int, T: int, D: int, H: int, out_itemsize: int) -> int:
    """Vreg- and VMEM-aware batch tile.

    * vreg: register-carried f32 state h (tb,D) + hidden z (tb,H) should fit
      comfortably in the 64 x 4 KiB register file: 2*tb*max(D,H)*4 <= ~128 KiB.
    * VMEM: resident output block <= ~4 MiB single copy (~8 MiB double-buffered)
      -> safe vs v5e's 16 MiB scoped default and v7x's 64 MiB physical VMEM.
    * megacore: prefer >= 2 tiles so ("parallel",) engages both v7x TCs.
    """
    vreg_budget = 128 * 1024
    vmem_budget = 4 << 20
    cands = [c for c in (256, 128, 64, 32, 16, 8)
             if B % c == 0
             and 2 * c * max(D, H) * 4 <= vreg_budget
             and c * T * D * out_itemsize <= vmem_budget]
    if not cands:
        return B                      # tiny / awkward B: one full-batch tile
    for c in cands:
        if B // c >= 2:
            return c
    return cands[0]


def ode_adjoint_forward(latents, w1, b1, w2, b2, *, max_time: int, dt: float,
                        matmul_dtype=jnp.bfloat16, batch_tile: int | None = None,
                        time_unroll_cap: int = 32):
    """Pallas equivalent of ODEAdjointWrapper.forward(latents, max_time, dt).

    Returns (B, max_time + 1, D): torchdiffeq fixed-step Euler trajectory,
    batch-major (written batch-major directly by the kernel).
    """
    B, D = latents.shape
    Din, H = w1.shape
    assert Din == D and w2.shape == (H, D)
    b1 = jnp.reshape(b1, (1, H))
    b2 = jnp.reshape(b2, (1, D))

    T = int(max_time) + 1
    substeps = int(round(1.0 / float(dt)))
    # TODO(synk): torchdiffeq clips a non-divisible final substep; here dt must
    #             exactly divide the unit interval.
    assert abs(substeps * float(dt) - 1.0) < 1e-6, "dt must evenly divide 1.0"

    out_dtype = latents.dtype
    itemsize = jnp.dtype(out_dtype).itemsize
    tb = batch_tile if batch_tile is not None else _pick_batch_tile(B, T, D, H, itemsize)
    assert B % tb == 0
    nb = B // tb

    unroll_time = T <= time_unroll_cap

    kernel = functools.partial(
        _ode_euler_kernel, dt=float(dt), substeps=substeps, n_times=T,
        compute_dtype=matmul_dtype, unroll_time=unroll_time)

    in_specs = [
        pl.BlockSpec((tb, D), lambda b: (b, 0)),    # latents (batch tile)
        pl.BlockSpec((D, H), lambda b: (0, 0)),     # W1 (VMEM-resident)
        pl.BlockSpec((1, H), lambda b: (0, 0)),     # b1
        pl.BlockSpec((H, D), lambda b: (0, 0)),     # W2
        pl.BlockSpec((1, D), lambda b: (0, 0)),     # b2
    ]

    if unroll_time:
        # Lane-dense flattened output: dense VMEM block + dense writeback DMA
        # even when D < 128.  Reshaped back to (B, T, D) below (free).
        out_shape = jax.ShapeDtypeStruct((B, T * D), out_dtype)
        out_specs = pl.BlockSpec((tb, T * D), lambda b: (b, 0))
    else:
        out_shape = jax.ShapeDtypeStruct((B, T, D), out_dtype)
        out_specs = pl.BlockSpec((tb, T, D), lambda b: (b, 0, 0))

    in_bytes = sum(a.size * jnp.dtype(a.dtype).itemsize
                   for a in (latents, w1, b1, w2, b2))
    cost = pl.CostEstimate(
        flops=4 * B * D * H * substeps * int(max_time),
        transcendentals=B * H * substeps * int(max_time),
        bytes_accessed=in_bytes + B * T * D * itemsize,
    )

    out = pl.pallas_call(
        kernel,
        out_shape=out_shape,
        grid_spec=pltpu.PrefetchScalarGridSpec(
            num_scalar_prefetch=0,
            grid=(nb,),
            in_specs=in_specs,
            out_specs=out_specs,
        ),
        compiler_params=pltpu.CompilerParams(
            dimension_semantics=("parallel",)),   # batch tiles split across v7x TCs
        cost_estimate=cost,
    )(latents, w1, b1, w2, b2)

    if unroll_time:
        out = out.reshape(B, T, D)   # contiguous split of the last dim: free
    return out


def _reference_forward(latents, w1, b1, w2, b2, *, max_time: int, dt: float):
    """Pure-JAX reference (fixed-step Euler), batch-major (B, T+1, D)."""
    substeps = int(round(1.0 / dt))
    b1 = jnp.reshape(b1, (1, -1))
    b2 = jnp.reshape(b2, (1, -1))

    def dyn(h):
        return jnp.tanh(h @ w1 + b1) @ w2 + b2

    h = latents.astype(jnp.float32)
    outs = [h]
    for _ in range(max_time):
        for _ in range(substeps):
            h = h + dt * dyn(h)
        outs.append(h)
    return jnp.stack(outs, axis=1).astype(latents.dtype)   # (B, T+1, D)


if __name__ == "__main__":
    key = jax.random.PRNGKey(0)
    k_x, k_w1, k_b1, k_w2, k_b2 = jax.random.split(key, 5)

    B, D, H = 2, 32, 64
    max_time = 4
    dt = 0.5

    latents = jax.random.normal(k_x, (B, D), dtype=jnp.float32)
    # Deterministic synthetic ODE-function parameters (small scale for stability).
    w1 = 0.1 * jax.random.normal(k_w1, (D, H), dtype=jnp.float32)
    b1 = 0.1 * jax.random.normal(k_b1, (1, H), dtype=jnp.float32)
    w2 = 0.1 * jax.random.normal(k_w2, (H, D), dtype=jnp.float32)
    b2 = 0.1 * jax.random.normal(k_b2, (1, D), dtype=jnp.float32)

    ref = _reference_forward(latents, w1, b1, w2, b2, max_time=max_time, dt=dt)

    # 1) Default path: bf16 MXU operands (f32 state / accumulation), static
    #    time unroll, lane-dense flattened output.
    out = jax.block_until_ready(
        ode_adjoint_forward(latents, w1, b1, w2, b2, max_time=max_time, dt=dt))
    assert out.shape == (B, max_time + 1, D), out.shape
    assert jnp.allclose(out, ref, atol=5e-2, rtol=5e-2), "bf16 path mismatch"

    # 2) Full-precision path (bit-tight vs the f32 reference).
    out_f32 = jax.block_until_ready(
        ode_adjoint_forward(latents, w1, b1, w2, b2, max_time=max_time, dt=dt,
                            matmul_dtype=jnp.float32))
    assert jnp.allclose(out_f32, ref, atol=1e-5, rtol=1e-5), "f32 path mismatch"

    # 3) Large-T fallback path (fori_loop over time + dynamic-sublane stores),
    #    forced here by setting time_unroll_cap=0, validated in f32.
    out_dyn = jax.block_until_ready(
        ode_adjoint_forward(latents, w1, b1, w2, b2, max_time=max_time, dt=dt,
                            matmul_dtype=jnp.float32, time_unroll_cap=0))
    assert out_dyn.shape == (B, max_time + 1, D), out_dyn.shape
    assert jnp.allclose(out_dyn, ref, atol=1e-5, rtol=1e-5), "dynamic-T path mismatch"

    print("KERNEL_OK")
</pallas_src>

<mosaic_0001>
module attributes {stable_mosaic.version = 11 : i64} {
  func.func @_ode_euler_kernel(%arg0: i32, %arg1: memref<2x32xf32, #tpu.memory_space<vmem>>, %arg2: memref<32x64xf32, #tpu.memory_space<vmem>>, %arg3: memref<1x64xf32, #tpu.memory_space<vmem>>, %arg4: memref<64x32xf32, #tpu.memory_space<vmem>>, %arg5: memref<1x32xf32, #tpu.memory_space<vmem>>, %arg6: memref<2x160xf32, #tpu.memory_space<vmem>>) attributes {dimension_semantics = [#tpu.dimension_semantics<parallel>], iteration_bounds = array<i64: 1>, scalar_prefetch = 0 : i64, scratch_operands = 0 : i64, tpu.core_type = #tpu.core_type<tc>, window_params = [{transform_indices = @transform_0, window_bounds = array<i64: 2, 32>}, {pipeline_mode = #tpu.pipeline_mode<synchronous>, transform_indices = @transform_1, window_bounds = array<i64: 32, 64>}, {pipeline_mode = #tpu.pipeline_mode<synchronous>, transform_indices = @transform_2, window_bounds = array<i64: 1, 64>}, {pipeline_mode = #tpu.pipeline_mode<synchronous>, transform_indices = @transform_3, window_bounds = array<i64: 64, 32>}, {pipeline_mode = #tpu.pipeline_mode<synchronous>, transform_indices = @transform_4, window_bounds = array<i64: 1, 32>}, {transform_indices = @transform_5, window_bounds = array<i64: 2, 160>}]} {
    %c0 = arith.constant 0 : index
    %c0_0 = arith.constant 0 : index
    %0 = vector.load %arg2[%c0, %c0_0] : memref<32x64xf32, #tpu.memory_space<vmem>>, vector<32x64xf32>
    %1 = arith.truncf %0 : vector<32x64xf32> to vector<32x64xbf16>
    %c0_1 = arith.constant 0 : index
    %c0_2 = arith.constant 0 : index
    %2 = vector.load %arg4[%c0_1, %c0_2] : memref<64x32xf32, #tpu.memory_space<vmem>>, vector<64x32xf32>
    %cst = arith.constant 5.000000e-01 : f32
    %3 = vector.broadcast %cst : f32 to vector<64x32xf32>
    %4 = arith.mulf %2, %3 : vector<64x32xf32>
    %5 = arith.truncf %4 : vector<64x32xf32> to vector<64x32xbf16>
    %c0_3 = arith.constant 0 : index
    %c0_4 = arith.constant 0 : index
    %6 = vector.load %arg3[%c0_3, %c0_4] : memref<1x64xf32, #tpu.memory_space<vmem>>, vector<1x64xf32>
    %c0_5 = arith.constant 0 : index
    %c0_6 = arith.constant 0 : index
    %7 = vector.load %arg5[%c0_5, %c0_6] : memref<1x32xf32, #tpu.memory_space<vmem>>, vector<1x32xf32>
    %cst_7 = arith.constant 5.000000e-01 : f32
    %8 = vector.broadcast %cst_7 : f32 to vector<1x32xf32>
    %9 = arith.mulf %7, %8 : vector<1x32xf32>
    %c0_8 = arith.constant 0 : index
    %c0_9 = arith.constant 0 : index
    %10 = vector.load %arg1[%c0_8, %c0_9] : memref<2x32xf32, #tpu.memory_space<vmem>>, vector<2x32xf32>
    %c0_10 = arith.constant 0 : index
    %c0_11 = arith.constant 0 : index
    %11 = vector.load %arg6[%c0_10, %c0_11] : memref<2x160xf32, #tpu.memory_space<vmem>>, vector<2x32xf32>
    tpu.vector_store %arg6[%c0_10, %c0_11], %10 {strides = array<i32>} : memref<2x160xf32, #tpu.memory_space<vmem>>, vector<2x32xf32>,
    %c0_i32 = arith.constant 0 : i32
    %12 = arith.truncf %10 : vector<2x32xf32> to vector<2x32xbf16>
    %cst_12 = arith.constant dense<0.000000e+00> : vector<2x64xf32>
    %13 = tpu.matmul %12, %1, %cst_12 {dimension_numbers = #tpu.dot_dimension_numbers<[1], [0], [0], [1], [0, 0, 1, 1], [], []>} : vector<2x32xbf16>, vector<32x64xbf16>, vector<2x64xf32> -> vector<2x64xf32>
    %14 = vector.broadcast %6 : vector<1x64xf32> to vector<2x64xf32>
    %15 = arith.addf %13, %14 : vector<2x64xf32>
    %16 = arith.truncf %15 : vector<2x64xf32> to vector<2x64xbf16>
    %17 = math.tanh %16 : vector<2x64xbf16>
    %cst_13 = arith.constant dense<0.000000e+00> : vector<2x32xf32>
    %18 = tpu.matmul %17, %5, %cst_13 {dimension_numbers = #tpu.dot_dimension_numbers<[1], [0], [0], [1], [0, 0, 1, 1], [], []>} : vector<2x64xbf16>, vector<64x32xbf16>, vector<2x32xf32> -> vector<2x32xf32>
    %19 = vector.broadcast %9 : vector<1x32xf32> to vector<2x32xf32>
    %20 = arith.addf %18, %19 : vector<2x32xf32>
    %21 = arith.addf %10, %20 : vector<2x32xf32>
    %c1_i32 = arith.constant 1 : i32
    %22 = arith.truncf %21 : vector<2x32xf32> to vector<2x32xbf16>
    %cst_14 = arith.constant dense<0.000000e+00> : vector<2x64xf32>
    %23 = tpu.matmul %22, %1, %cst_14 {dimension_numbers = #tpu.dot_dimension_numbers<[1], [0], [0], [1], [0, 0, 1, 1], [], []>} : vector<2x32xbf16>, vector<32x64xbf16>, vector<2x64xf32> -> vector<2x64xf32>
    %24 = vector.broadcast %6 : vector<1x64xf32> to vector<2x64xf32>
    %25 = arith.addf %23, %24 : vector<2x64xf32>
    %26 = arith.truncf %25 : vector<2x64xf32> to vector<2x64xbf16>
    %27 = math.tanh %26 : vector<2x64xbf16>
    %cst_15 = arith.constant dense<0.000000e+00> : vector<2x32xf32>
    %28 = tpu.matmul %27, %5, %cst_15 {dimension_numbers = #tpu.dot_dimension_numbers<[1], [0], [0], [1], [0, 0, 1, 1], [], []>} : vector<2x64xbf16>, vector<64x32xbf16>, vector<2x32xf32> -> vector<2x32xf32>
    %29 = vector.broadcast %9 : vector<1x32xf32> to vector<2x32xf32>
    %30 = arith.addf %28, %29 : vector<2x32xf32>
    %31 = arith.addf %21, %30 : vector<2x32xf32>
    %c0_16 = arith.constant 0 : index
    %c32 = arith.constant 32 : index
    %32 = vector.load %arg6[%c0_16, %c32] : memref<2x160xf32, #tpu.memory_space<vmem>>, vector<2x32xf32>
    tpu.vector_store %arg6[%c0_16, %c32], %31 {strides = array<i32>} : memref<2x160xf32, #tpu.memory_space<vmem>>, vector<2x32xf32>,
    %c0_i32_17 = arith.constant 0 : i32
    %33 = arith.truncf %31 : vector<2x32xf32> to vector<2x32xbf16>
    %cst_18 = arith.constant dense<0.000000e+00> : vector<2x64xf32>
    %34 = tpu.matmul %33, %1, %cst_18 {dimension_numbers = #tpu.dot_dimension_numbers<[1], [0], [0], [1], [0, 0, 1, 1], [], []>} : vector<2x32xbf16>, vector<32x64xbf16>, vector<2x64xf32> -> vector<2x64xf32>
    %35 = vector.broadcast %6 : vector<1x64xf32> to vector<2x64xf32>
    %36 = arith.addf %34, %35 : vector<2x64xf32>
    %37 = arith.truncf %36 : vector<2x64xf32> to vector<2x64xbf16>
    %38 = math.tanh %37 : vector<2x64xbf16>
    %cst_19 = arith.constant dense<0.000000e+00> : vector<2x32xf32>
    %39 = tpu.matmul %38, %5, %cst_19 {dimension_numbers = #tpu.dot_dimension_numbers<[1], [0], [0], [1], [0, 0, 1, 1], [], []>} : vector<2x64xbf16>, vector<64x32xbf16>, vector<2x32xf32> -> vector<2x32xf32>
    %40 = vector.broadcast %9 : vector<1x32xf32> to vector<2x32xf32>
    %41 = arith.addf %39, %40 : vector<2x32xf32>
    %42 = arith.addf %31, %41 : vector<2x32xf32>
    %c1_i32_20 = arith.constant 1 : i32
    %43 = arith.truncf %42 : vector<2x32xf32> to vector<2x32xbf16>
    %cst_21 = arith.constant dense<0.000000e+00> : vector<2x64xf32>
    %44 = tpu.matmul %43, %1, %cst_21 {dimension_numbers = #tpu.dot_dimension_numbers<[1], [0], [0], [1], [0, 0, 1, 1], [], []>} : vector<2x32xbf16>, vector<32x64xbf16>, vector<2x64xf32> -> vector<2x64xf32>
    %45 = vector.broadcast %6 : vector<1x64xf32> to vector<2x64xf32>
    %46 = arith.addf %44, %45 : vector<2x64xf32>
    %47 = arith.truncf %46 : vector<2x64xf32> to vector<2x64xbf16>
    %48 = math.tanh %47 : vector<2x64xbf16>
    %cst_22 = arith.constant dense<0.000000e+00> : vector<2x32xf32>
    %49 = tpu.matmul %48, %5, %cst_22 {dimension_numbers = #tpu.dot_dimension_numbers<[1], [0], [0], [1], [0, 0, 1, 1], [], []>} : vector<2x64xbf16>, vector<64x32xbf16>, vector<2x32xf32> -> vector<2x32xf32>
    %50 = vector.broadcast %9 : vector<1x32xf32> to vector<2x32xf32>
    %51 = arith.addf %49, %50 : vector<2x32xf32>
    %52 = arith.addf %42, %51 : vector<2x32xf32>
    %c0_23 = arith.constant 0 : index
    %c64 = arith.constant 64 : index
    %53 = vector.load %arg6[%c0_23, %c64] : memref<2x160xf32, #tpu.memory_space<vmem>>, vector<2x32xf32>
    tpu.vector_store %arg6[%c0_23, %c64], %52 {strides = array<i32>} : memref<2x160xf32, #tpu.memory_space<vmem>>, vector<2x32xf32>,
    %c0_i32_24 = arith.constant 0 : i32
    %54 = arith.truncf %52 : vector<2x32xf32> to vector<2x32xbf16>
    %cst_25 = arith.constant dense<0.000000e+00> : vector<2x64xf32>
    %55 = tpu.matmul %54, %1, %cst_25 {dimension_numbers = #tpu.dot_dimension_numbers<[1], [0], [0], [1], [0, 0, 1, 1], [], []>} : vector<2x32xbf16>, vector<32x64xbf16>, vector<2x64xf32> -> vector<2x64xf32>
    %56 = vector.broadcast %6 : vector<1x64xf32> to vector<2x64xf32>
    %57 = arith.addf %55, %56 : vector<2x64xf32>
    %58 = arith.truncf %57 : vector<2x64xf32> to vector<2x64xbf16>
    %59 = math.tanh %58 : vector<2x64xbf16>
    %cst_26 = arith.constant dense<0.000000e+00> : vector<2x32xf32>
    %60 = tpu.matmul %59, %5, %cst_26 {dimension_numbers = #tpu.dot_dimension_numbers<[1], [0], [0], [1], [0, 0, 1, 1], [], []>} : vector<2x64xbf16>, vector<64x32xbf16>, vector<2x32xf32> -> vector<2x32xf32>
    %61 = vector.broadcast %9 : vector<1x32xf32> to vector<2x32xf32>
    %62 = arith.addf %60, %61 : vector<2x32xf32>
    %63 = arith.addf %52, %62 : vector<2x32xf32>
    %c1_i32_27 = arith.constant 1 : i32
    %64 = arith.truncf %63 : vector<2x32xf32> to vector<2x32xbf16>
    %cst_28 = arith.constant dense<0.000000e+00> : vector<2x64xf32>
    %65 = tpu.matmul %64, %1, %cst_28 {dimension_numbers = #tpu.dot_dimension_numbers<[1], [0], [0], [1], [0, 0, 1, 1], [], []>} : vector<2x32xbf16>, vector<32x64xbf16>, vector<2x64xf32> -> vector<2x64xf32>
    %66 = vector.broadcast %6 : vector<1x64xf32> to vector<2x64xf32>
    %67 = arith.addf %65, %66 : vector<2x64xf32>
    %68 = arith.truncf %67 : vector<2x64xf32> to vector<2x64xbf16>
    %69 = math.tanh %68 : vector<2x64xbf16>
    %cst_29 = arith.constant dense<0.000000e+00> : vector<2x32xf32>
    %70 = tpu.matmul %69, %5, %cst_29 {dimension_numbers = #tpu.dot_dimension_numbers<[1], [0], [0], [1], [0, 0, 1, 1], [], []>} : vector<2x64xbf16>, vector<64x32xbf16>, vector<2x32xf32> -> vector<2x32xf32>
    %71 = vector.broadcast %9 : vector<1x32xf32> to vector<2x32xf32>
    %72 = arith.addf %70, %71 : vector<2x32xf32>
    %73 = arith.addf %63, %72 : vector<2x32xf32>
    %c0_30 = arith.constant 0 : index
    %c96 = arith.constant 96 : index
    %74 = vector.load %arg6[%c0_30, %c96] : memref<2x160xf32, #tpu.memory_space<vmem>>, vector<2x32xf32>
    tpu.vector_store %arg6[%c0_30, %c96], %73 {strides = array<i32>} : memref<2x160xf32, #tpu.memory_space<vmem>>, vector<2x32xf32>,
    %c0_i32_31 = arith.constant 0 : i32
    %75 = arith.truncf %73 : vector<2x32xf32> to vector<2x32xbf16>
    %cst_32 = arith.constant dense<0.000000e+00> : vector<2x64xf32>
    %76 = tpu.matmul %75, %1, %cst_32 {dimension_numbers = #tpu.dot_dimension_numbers<[1], [0], [0], [1], [0, 0, 1, 1], [], []>} : vector<2x32xbf16>, vector<32x64xbf16>, vector<2x64xf32> -> vector<2x64xf32>
    %77 = vector.broadcast %6 : vector<1x64xf32> to vector<2x64xf32>
    %78 = arith.addf %76, %77 : vector<2x64xf32>
    %79 = arith.truncf %78 : vector<2x64xf32> to vector<2x64xbf16>
    %80 = math.tanh %79 : vector<2x64xbf16>
    %cst_33 = arith.constant dense<0.000000e+00> : vector<2x32xf32>
    %81 = tpu.matmul %80, %5, %cst_33 {dimension_numbers = #tpu.dot_dimension_numbers<[1], [0], [0], [1], [0, 0, 1, 1], [], []>} : vector<2x64xbf16>, vector<64x32xbf16>, vector<2x32xf32> -> vector<2x32xf32>
    %82 = vector.broadcast %9 : vector<1x32xf32> to vector<2x32xf32>
    %83 = arith.addf %81, %82 : vector<2x32xf32>
    %84 = arith.addf %73, %83 : vector<2x32xf32>
    %c1_i32_34 = arith.constant 1 : i32
    %85 = arith.truncf %84 : vector<2x32xf32> to vector<2x32xbf16>
    %cst_35 = arith.constant dense<0.000000e+00> : vector<2x64xf32>
    %86 = tpu.matmul %85, %1, %cst_35 {dimension_numbers = #tpu.dot_dimension_numbers<[1], [0], [0], [1], [0, 0, 1, 1], [], []>} : vector<2x32xbf16>, vector<32x64xbf16>, vector<2x64xf32> -> vector<2x64xf32>
    %87 = vector.broadcast %6 : vector<1x64xf32> to vector<2x64xf32>
    %88 = arith.addf %86, %87 : vector<2x64xf32>
    %89 = arith.truncf %88 : vector<2x64xf32> to vector<2x64xbf16>
    %90 = math.tanh %89 : vector<2x64xbf16>
    %cst_36 = arith.constant dense<0.000000e+00> : vector<2x32xf32>
    %91 = tpu.matmul %90, %5, %cst_36 {dimension_numbers = #tpu.dot_dimension_numbers<[1], [0], [0], [1], [0, 0, 1, 1], [], []>} : vector<2x64xbf16>, vector<64x32xbf16>, vector<2x32xf32> -> vector<2x32xf32>
    %92 = vector.broadcast %9 : vector<1x32xf32> to vector<2x32xf32>
    %93 = arith.addf %91, %92 : vector<2x32xf32>
    %94 = arith.addf %84, %93 : vector<2x32xf32>
    %c0_37 = arith.constant 0 : index
    %c128 = arith.constant 128 : index
    %95 = vector.load %arg6[%c0_37, %c128] : memref<2x160xf32, #tpu.memory_space<vmem>>, vector<2x32xf32>
    tpu.vector_store %arg6[%c0_37, %c128], %94 {strides = array<i32>} : memref<2x160xf32, #tpu.memory_space<vmem>>, vector<2x32xf32>,
    return
  }
  func.func @transform_0(%arg0: i32) -> (i32, i32) {
    %c0_i32 = arith.constant 0 : i32
    %c0_i32_0 = arith.constant 0 : i32
    return %arg0, %c0_i32 : i32, i32
  }
  func.func @transform_1(%arg0: i32) -> (i32, i32) {
    %c0_i32 = arith.constant 0 : i32
    %c0_i32_0 = arith.constant 0 : i32
    %c0_i32_1 = arith.constant 0 : i32
    return %c0_i32, %c0_i32_0 : i32, i32
  }
  func.func @transform_2(%arg0: i32) -> (i32, i32) {
    %c0_i32 = arith.constant 0 : i32
    %c0_i32_0 = arith.constant 0 : i32
    %c0_i32_1 = arith.constant 0 : i32
    return %c0_i32, %c0_i32_0 : i32, i32
  }
  func.func @transform_3(%arg0: i32) -> (i32, i32) {
    %c0_i32 = arith.constant 0 : i32
    %c0_i32_0 = arith.constant 0 : i32
    %c0_i32_1 = arith.constant 0 : i32
    return %c0_i32, %c0_i32_0 : i32, i32
  }
  func.func @transform_4(%arg0: i32) -> (i32, i32) {
    %c0_i32 = arith.constant 0 : i32
    %c0_i32_0 = arith.constant 0 : i32
    %c0_i32_1 = arith.constant 0 : i32
    return %c0_i32, %c0_i32_0 : i32, i32
  }
  func.func @transform_5(%arg0: i32) -> (i32, i32) {
    %c0_i32 = arith.constant 0 : i32
    %c0_i32_0 = arith.constant 0 : i32
    return %arg0, %c0_i32 : i32, i32
  }
}

</mosaic_0001>

<bundles_post_ra>
// kernel: tpu_custom_call.1
= control target key start
LH: loop header
LB: loop body
LE: loop exit
PB: predicated region body
PF: predicated region fallthrough
CT: control target
= control target key end

     0   :  { %s650_s0 = inlined_call_operand.vmem [shape: f32[2,32], index: 0, kind: input, shape index: {}]   ;;  %s651_s1 = inlined_call_operand.vmem [shape: f32[32,64], index: 1, kind: input, shape index: {}]   ;;  %s652_s2 = inlined_call_operand.vmem [shape: f32[1,64], index: 2, kind: input, shape index: {}]   ;;  %s653_s3 = inlined_call_operand.vmem [shape: f32[64,32], index: 3, kind: input, shape index: {}]   ;;  %s654_s4 = inlined_call_operand.vmem [shape: f32[1,32], index: 4, kind: input, shape index: {}]   ;;  %s655_s5 = inlined_call_operand.hbm [shape: f32[2,160], index: 5, kind: output, shape index: {}]  }
   0x1   :  { %v24_v0 = vld [vmem:[%s651_s1 + $0x10] sm:$0xff]  ;;  %v25_v1 = vld [vmem:[%s651_s1 + $0x18] sm:$0xff]  ;;  %v22_v2 = vld [vmem:[%s651_s1] sm:$0xff] }
   0x2   :  { %v507_v3 = vpack.c.bf16 %v25_v1, %v24_v0  ;;  %v23_v4 = vld [vmem:[%s651_s1 + $0x8] sm:$0xff] }
   0x3   :  { %10 = vsyncpa [#allocation3], 0  ;;  %v513_v5 = vpack.c.bf16 %v23_v4, %v22_v2  ;;  %v518_v6 = vld [vmem:[%s650_s0] sm:$0x3]  ;;  %vm58_vm0 = vcmask 261120   ;;  %v34_v8 = vld [vmem:[%s653_s3 + $0x30] sm:$0xff] }
   0x4   :  { %68 = vmatpush.bf16.msra.mxu0 %v507_v3  ;;  %110 = vmatpush.bf16.msra.mxu2 %v507_v3  ;;  %v54_v7 = vpack.c.bf16 %v518_v6, %v518_v6  ;;  %v35_v9 = vld [vmem:[%s653_s3 + $0x38] sm:$0xff]  ;;  %v42_v10 = vmul.f32 0.5, %v34_v8  ;;  %v32_v13 = vld [vmem:[%s653_s3 + $0x20] sm:$0xff]  ;;  %v33_v14 = vld [vmem:[%s653_s3 + $0x28] sm:$0xff]  ;;  %vm82_vm1 = vcmask 523264   ;;  %vm52_vm2 = vcmask 254976  }
   0x5   :  { %v43_v11 = vmul.f32 0.5, %v35_v9  ;;  %v40_v15 = vmul.f32 0.5, %v32_v13  ;;  %v41_v16 = vmul.f32 0.5, %v33_v14  ;;  %v30_v18 = vld [vmem:[%s653_s3 + $0x10] sm:$0xff]  ;;  %v31_v19 = vld [vmem:[%s653_s3 + $0x18] sm:$0xff]  ;;  %v28_v23 = vld [vmem:[%s653_s3] sm:$0xff] }
   0x6   :  { %v38_v20 = vmul.f32 0.5, %v30_v18  ;;  %v39_v21 = vmul.f32 0.5, %v31_v19  ;;  %v29_v24 = vld [vmem:[%s653_s3 + $0x8] sm:$0xff]  ;;  %v36_v25 = vmul.f32 0.5, %v28_v23  ;;  %v583_v28 = vld [vmem:[%s652_s2] ss:$0 sm:$0xff] }
   0x7   :  { %v536_v12 = vpack.c.bf16 %v43_v11, %v42_v10  ;;  %v547_v17 = vpack.c.bf16 %v41_v16, %v40_v15  ;;  %v37_v26 = vmul.f32 0.5, %v29_v24  ;;  %v49_v36 = vld [vmem:[%s654_s4] sm:$0x1]  ;;  %53 = vst.msk [vmem:[#allocation2] sm:$0x3] %vm52_vm2, %v518_v6  ;;  %s464_s2 = smov 32  }
   0x8   :  { %69 = vmatpush.bf16.msra.mxu0 %v513_v5  ;;  %111 = vmatpush.bf16.msra.mxu2 %v513_v5  ;;  %v558_v22 = vpack.c.bf16 %v39_v21, %v38_v20  ;;  %v50_v37 = vmul.f32 0.5, %v49_v36  ;;  %vm142_vm3 = vcmask 517376   ;;  %s465_s4 = smov 64   ;;  %vm224_vm4 = vcmask 779776   ;;  %s466_s20 = smov 96  }
   0x9   :  { %90 = vmatpush.bf16.msra.mxu1 %v536_v12  ;;  %128 = vmatpush.bf16.msra.mxu3 %v536_v12  ;;  %v569_v27 = vpack.c.bf16 %v37_v26, %v36_v25  ;;  %vm306_vm5 = vcmask 1042176   ;;  %s467_s21 = smov [#allocation2]   ;;  %s392_s25 = sshll.u32 %s655_s5, 4  ;;  %s393_s25 = int_to_ptr.hbm [resolvable:$true] %s392_s25 }
   0xa   :  { %v592_v38 = vperm.slane %v50_v37, 0  ;;  %s390_s22 = sshll.u32 %s467_s21, 4  ;;  %s391_s22 = int_to_ptr.vmem [resolvable:$true] %s390_s22 }
   0xb   :  { %401 = vmatmul.msk.bf16.vlgmr.msra.gmra.mxu0 %vm58_vm0, %v54_v7 }
   0xc   :  { %154 = vmatpush.bf16.msrb.mxu0 %v507_v3  ;;  %172 = vmatpush.bf16.msrb.mxu2 %v536_v12 }
   0xd   :  { %91 = vmatpush.bf16.msra.mxu1 %v547_v17  ;;  %129 = vmatpush.bf16.msra.mxu3 %v547_v17 }
  0x10   :  { %155 = vmatpush.bf16.msrb.mxu0 %v513_v5  ;;  %173 = vmatpush.bf16.msrb.mxu2 %v547_v17 }
  0x11   :  { %92 = vmatpush.bf16.msra.mxu1 %v558_v22  ;;  %130 = vmatpush.bf16.msra.mxu3 %v558_v22 }
  0x14   :  { %236 = vmatpush.bf16.msra.mxu0 %v507_v3  ;;  %174 = vmatpush.bf16.msrb.mxu2 %v558_v22 }
  0x15   :  { %93 = vmatpush.bf16.msra.mxu1 %v569_v27  ;;  %131 = vmatpush.bf16.msra.mxu3 %v569_v27 }
  0x18   :  { %237 = vmatpush.bf16.msra.mxu0 %v513_v5  ;;  %175 = vmatpush.bf16.msrb.mxu2 %v569_v27 }
  0x19   :  { %192 = vmatpush.bf16.msrb.mxu1 %v507_v3  ;;  %210 = vmatpush.bf16.msrb.mxu3 %v536_v12 }
  0x1d   :  { %193 = vmatpush.bf16.msrb.mxu1 %v513_v5  ;;  %211 = vmatpush.bf16.msrb.mxu3 %v547_v17 }
  0x21   :  { %212 = vmatpush.bf16.msrb.mxu3 %v558_v22 }
  0x25   :  { %213 = vmatpush.bf16.msrb.mxu3 %v569_v27 }
  0x88   :  { %v71_v29 = vpop.f32.mrf.mxu0 }
  0x89   :  { %v72_v30 = vadd.f32 %v583_v28, %v71_v29 }
  0x8b   :  { %v75_v31 = vpack.c.bf16 %v72_v30, %v72_v30 }
  0x8d   :  { %v76_v32 = vunpack.c.l.bf16 %v75_v31 }
  0x8f   :  { %422 = vtanh.f32 %v76_v32 }
  0x90   :  { %v73_v33 = vpop.f32.mrf.mxu0 }
  0x95   :  { %v423_v34 = vpop.eup %422 }
  0x96   :  { %v78_v35 = vpack.c.bf16 %v423_v34, %v423_v34 }
  0x98   :  { %402 = vmatmul.msk.bf16.vlgmr.msra.gmra.mxu1 %vm82_vm1, %v78_v35 }
  0x99   :  { %274 = vmatpush.bf16.msra.mxu1 %v507_v3 }
  0x9d   :  { %275 = vmatpush.bf16.msra.mxu1 %v513_v5 }
 0x115   :  { %v95_v39 = vpop.f32.mrf.mxu1 }
 0x116   :  { %v96_v40 = vadd.f32 %v95_v39, %v592_v38 }
 0x118   :  { %v99_v41 = vadd.f32 %v96_v40, %v518_v6 }
 0x11a   :  { %v100_v42 = vpack.c.bf16 %v99_v41, %v99_v41 }
 0x11c   :  { %403 = vmatmul.msk.bf16.vlgmr.msra.gmra.mxu2 %vm58_vm0, %v100_v42 }
 0x11d   :  { %v97_v43 = vpop.f32.mrf.mxu1  ;;  %254 = vmatpush.bf16.msra.mxu2 %v536_v12 }
 0x121   :  { %255 = vmatpush.bf16.msra.mxu2 %v547_v17 }
 0x125   :  { %256 = vmatpush.bf16.msra.mxu2 %v558_v22 }
 0x129   :  { %257 = vmatpush.bf16.msra.mxu2 %v569_v27 }
 0x19f   :  { %v113_v44 = vpop.f32.mrf.mxu2 }
 0x1a0   :  { %v114_v45 = vadd.f32 %v583_v28, %v113_v44 }
 0x1a2   :  { %v117_v46 = vpack.c.bf16 %v114_v45, %v114_v45 }
 0x1a4   :  { %v118_v47 = vunpack.c.l.bf16 %v117_v46 }
 0x1a6   :  { %424 = vtanh.f32 %v118_v47 }
 0x1a7   :  { %v115_v48 = vpop.f32.mrf.mxu2 }
 0x1ac   :  { %v425_v49 = vpop.eup %424 }
 0x1ad   :  { %v120_v50 = vpack.c.bf16 %v425_v49, %v425_v49 }
 0x1af   :  { %404 = vmatmul.msk.bf16.vlgmr.msra.gmra.mxu3 %vm82_vm1, %v120_v50 }
 0x1b0   :  { %292 = vmatpush.bf16.msra.mxu3 %v536_v12 }
 0x1b4   :  { %293 = vmatpush.bf16.msra.mxu3 %v547_v17 }
 0x1b8   :  { %294 = vmatpush.bf16.msra.mxu3 %v558_v22 }
 0x1bc   :  { %295 = vmatpush.bf16.msra.mxu3 %v569_v27 }
 0x232   :  { %v133_v51 = vpop.f32.mrf.mxu3 }
 0x233   :  { %v134_v52 = vadd.f32 %v133_v51, %v592_v38 }
 0x235   :  { %v137_v53 = vadd.f32 %v134_v52, %v99_v41 }
 0x237   :  { %v144_v54 = vpack.c.bf16 %v137_v53, %v137_v53  ;;  %139 = vrot.lane.b32.xlu0 %v137_v53, %s464_s2 }
 0x239   :  { %405 = vmatmul.msk.bf16.vlgmr.msrb.gmra.mxu0 %vm58_vm0, %v144_v54 }
 0x23a   :  { %v135_v55 = vpop.f32.mrf.mxu3  ;;  %318 = vmatpush.bf16.msrb.mxu0 %v507_v3 }
 0x23e   :  { %319 = vmatpush.bf16.msrb.mxu0 %v513_v5 }
 0x2a9   :  { %v140_v56 = vpop.permute.xlu0 %139 }
 0x2aa   :  { %143 = vst.msk [vmem:[#allocation2] sm:$0x3] %vm142_vm3, %v140_v56 }
 0x2b6   :  { %v157_v57 = vpop.f32.mrf.mxu0 }
 0x2b7   :  { %v158_v58 = vadd.f32 %v583_v28, %v157_v57 }
 0x2b9   :  { %v161_v59 = vpack.c.bf16 %v158_v58, %v158_v58 }
 0x2bb   :  { %v162_v60 = vunpack.c.l.bf16 %v161_v59 }
 0x2bd   :  { %426 = vtanh.f32 %v162_v60 }
 0x2be   :  { %v159_v61 = vpop.f32.mrf.mxu0 }
 0x2c3   :  { %v427_v62 = vpop.eup %426 }
 0x2c4   :  { %v164_v63 = vpack.c.bf16 %v427_v62, %v427_v62 }
 0x2c6   :  { %406 = vmatmul.msk.bf16.vlgmr.msrb.gmra.mxu2 %vm82_vm1, %v164_v63 }
 0x2c7   :  { %336 = vmatpush.bf16.msrb.mxu2 %v536_v12 }
 0x2cb   :  { %337 = vmatpush.bf16.msrb.mxu2 %v547_v17 }
 0x2cf   :  { %338 = vmatpush.bf16.msrb.mxu2 %v558_v22 }
 0x2d3   :  { %339 = vmatpush.bf16.msrb.mxu2 %v569_v27 }
 0x349   :  { %v177_v0 = vpop.f32.mrf.mxu2 }
 0x34a   :  { %v178_v1 = vadd.f32 %v177_v0, %v592_v38 }
 0x34c   :  { %v181_v2 = vadd.f32 %v178_v1, %v137_v53 }
 0x34e   :  { %v182_v4 = vpack.c.bf16 %v181_v2, %v181_v2 }
 0x350   :  { %407 = vmatmul.msk.bf16.vlgmr.msrb.gmra.mxu1 %vm58_vm0, %v182_v4 }
 0x351   :  { %v179_v6 = vpop.f32.mrf.mxu2  ;;  %356 = vmatpush.bf16.msrb.mxu1 %v507_v3 }
 0x355   :  { %357 = vmatpush.bf16.msrb.mxu1 %v513_v5 }
 0x3cd   :  { %v195_v7 = vpop.f32.mrf.mxu1 }
 0x3ce   :  { %v196_v8 = vadd.f32 %v583_v28, %v195_v7 }
 0x3d0   :  { %v199_v9 = vpack.c.bf16 %v196_v8, %v196_v8 }
 0x3d2   :  { %v200_v10 = vunpack.c.l.bf16 %v199_v9 }
 0x3d4   :  { %428 = vtanh.f32 %v200_v10 }
 0x3d5   :  { %v197_v11 = vpop.f32.mrf.mxu1 }
 0x3da   :  { %v429_v13 = vpop.eup %428 }
 0x3db   :  { %v202_v14 = vpack.c.bf16 %v429_v13, %v429_v13 }
 0x3dd   :  { %408 = vmatmul.msk.bf16.vlgmr.msrb.gmra.mxu3 %vm82_vm1, %v202_v14 }
 0x3de   :  { %374 = vmatpush.bf16.msrb.mxu3 %v536_v12 }
 0x3e2   :  { %375 = vmatpush.bf16.msrb.mxu3 %v547_v17 }
 0x3e6   :  { %376 = vmatpush.bf16.msrb.mxu3 %v558_v22 }
 0x3ea   :  { %377 = vmatpush.bf16.msrb.mxu3 %v569_v27 }
 0x460   :  { %v215_v3 = vpop.f32.mrf.mxu3 }
 0x461   :  { %v216_v5 = vadd.f32 %v215_v3, %v592_v38 }
 0x463   :  { %v219_v15 = vadd.f32 %v216_v5, %v181_v2 }
 0x465   :  { %v226_v16 = vpack.c.bf16 %v219_v15, %v219_v15  ;;  %221 = vrot.lane.b32.xlu0 %v219_v15, %s465_s4 }
 0x467   :  { %409 = vmatmul.msk.bf16.vlgmr.msra.gmra.mxu0 %vm58_vm0, %v226_v16 }
 0x468   :  { %v217_v18 = vpop.f32.mrf.mxu3 }
 0x4d7   :  { %v222_v19 = vpop.permute.xlu0 %221 }
 0x4d8   :  { %225 = vst.msk [vmem:[#allocation2] sm:$0x3] %vm224_vm4, %v222_v19 }
 0x4e4   :  { %v239_v12 = vpop.f32.mrf.mxu0 }
 0x4e5   :  { %v240_v17 = vadd.f32 %v583_v28, %v239_v12 }
 0x4e7   :  { %v243_v20 = vpack.c.bf16 %v240_v17, %v240_v17 }
 0x4e9   :  { %v244_v21 = vunpack.c.l.bf16 %v243_v20 }
 0x4eb   :  { %430 = vtanh.f32 %v244_v21 }
 0x4ec   :  { %v241_v22 = vpop.f32.mrf.mxu0 }
 0x4f1   :  { %v431_v23 = vpop.eup %430 }
 0x4f2   :  { %v246_v24 = vpack.c.bf16 %v431_v23, %v431_v23 }
 0x4f4   :  { %410 = vmatmul.msk.bf16.vlgmr.msra.gmra.mxu2 %vm82_vm1, %v246_v24 }
 0x577   :  { %v259_v25 = vpop.f32.mrf.mxu2 }
 0x578   :  { %v260_v26 = vadd.f32 %v259_v25, %v592_v38 }
 0x57a   :  { %v263_v27 = vadd.f32 %v260_v26, %v219_v15 }
 0x57c   :  { %v264_v29 = vpack.c.bf16 %v263_v27, %v263_v27 }
 0x57e   :  { %411 = vmatmul.msk.bf16.vlgmr.msra.gmra.mxu1 %vm58_vm0, %v264_v29 }
 0x57f   :  { %v261_v30 = vpop.f32.mrf.mxu2 }
 0x5fb   :  { %v277_v31 = vpop.f32.mrf.mxu1 }
 0x5fc   :  { %v278_v32 = vadd.f32 %v583_v28, %v277_v31 }
 0x5fe   :  { %v281_v33 = vpack.c.bf16 %v278_v32, %v278_v32 }
 0x600   :  { %v282_v34 = vunpack.c.l.bf16 %v281_v33 }
 0x602   :  { %432 = vtanh.f32 %v282_v34 }
 0x603   :  { %v279_v35 = vpop.f32.mrf.mxu1 }
 0x608   :  { %v433_v36 = vpop.eup %432 }
 0x609   :  { %v284_v37 = vpack.c.bf16 %v433_v36, %v433_v36 }
 0x60b   :  { %412 = vmatmul.msk.bf16.vlgmr.msra.gmra.mxu3 %vm82_vm1, %v284_v37 }
 0x68e   :  { %v297_v39 = vpop.f32.mrf.mxu3 }
 0x68f   :  { %v298_v40 = vadd.f32 %v297_v39, %v592_v38 }
 0x691   :  { %v301_v41 = vadd.f32 %v298_v40, %v263_v27 }
 0x693   :  { %v308_v42 = vpack.c.bf16 %v301_v41, %v301_v41  ;;  %303 = vrot.lane.b32.xlu1 %v301_v41, %s466_s20 }
 0x695   :  { %413 = vmatmul.msk.bf16.vlgmr.msrb.gmra.mxu0 %vm58_vm0, %v308_v42 }
 0x696   :  { %v299_v43 = vpop.f32.mrf.mxu3 }
 0x705   :  { %v304_v44 = vpop.permute.xlu1 %303 }
 0x706   :  { %307 = vst.msk [vmem:[#allocation2] sm:$0x3] %vm306_vm5, %v304_v44 }
 0x712   :  { %v321_v45 = vpop.f32.mrf.mxu0 }
 0x713   :  { %v322_v46 = vadd.f32 %v583_v28, %v321_v45 }
 0x715   :  { %v325_v47 = vpack.c.bf16 %v322_v46, %v322_v46 }
 0x717   :  { %v326_v48 = vunpack.c.l.bf16 %v325_v47 }
 0x719   :  { %434 = vtanh.f32 %v326_v48 }
 0x71a   :  { %v323_v49 = vpop.f32.mrf.mxu0 }
 0x71f   :  { %v435_v50 = vpop.eup %434 }
 0x720   :  { %v328_v51 = vpack.c.bf16 %v435_v50, %v435_v50 }
 0x722   :  { %414 = vmatmul.msk.bf16.vlgmr.msrb.gmra.mxu2 %vm82_vm1, %v328_v51 }
 0x7a5   :  { %v341_v52 = vpop.f32.mrf.mxu2 }
 0x7a6   :  { %v342_v53 = vadd.f32 %v341_v52, %v592_v38 }
 0x7a8   :  { %v345_v54 = vadd.f32 %v342_v53, %v301_v41 }
 0x7aa   :  { %v346_v55 = vpack.c.bf16 %v345_v54, %v345_v54 }
 0x7ac   :  { %415 = vmatmul.msk.bf16.vlgmr.msrb.gmra.mxu1 %vm58_vm0, %v346_v55 }
 0x7ad   :  { %v343_v56 = vpop.f32.mrf.mxu2 }
 0x829   :  { %v359_v57 = vpop.f32.mrf.mxu1 }
 0x82a   :  { %v360_v58 = vadd.f32 %v583_v28, %v359_v57 }
 0x82c   :  { %v363_v59 = vpack.c.bf16 %v360_v58, %v360_v58 }
 0x82e   :  { %v364_v60 = vunpack.c.l.bf16 %v363_v59 }
 0x830   :  { %436 = vtanh.f32 %v364_v60 }
 0x831   :  { %v361_v61 = vpop.f32.mrf.mxu1 }
 0x836   :  { %v437_v62 = vpop.eup %436 }
 0x837   :  { %v366_v63 = vpack.c.bf16 %v437_v62, %v437_v62 }
 0x839   :  { %416 = vmatmul.msk.bf16.vlgmr.msrb.gmra.mxu3 %vm82_vm1, %v366_v63 }
 0x8bc   :  { %v379_v0 = vpop.f32.mrf.mxu3 }
 0x8bd   :  { %v380_v1 = vadd.f32 %v379_v0, %v592_v38 }
 0x8bf   :  { %v383_v2 = vadd.f32 %v380_v1, %v345_v54 }
 0x8c1   :  { %384 = vst.msk [vmem:[#allocation2 + $0x2] sm:$0x3] %vm52_vm2, %v383_v2 }
 0x8c2   :  { %395 = dma.vmem_to_hbm [thread:$0]  %s391_s22, 64, %s393_s25, [#allocation3]  }
 0x8c4   :  { %v381_v28 = vpop.f32.mrf.mxu3 }
 0x8c5   :  { %462 = dma.done.wait [#allocation3], 64  }
 0x8c6   :  { %463 = vsyncadd [#allocation3], 4294967232 }
 0x8c7   :  { %400 = vsyncpa [#allocation3], 1 }

</bundles_post_ra>
